<compile_context>
chip_gen: v7x
topology: tpu7x:2x2x1
jax: 0.10.0
libtpu: 0.0.40
codegen_flags: <defaults>
</compile_context>

<pallas_src>
import jax
import jax.numpy as jnp
from jax.experimental import pallas as pl
from jax.experimental.pallas import tpu as pltpu

# ---- model dims (small, synthetic) ----
B = 16          # batch
IN = 32         # input features
HID = 64        # embed_net hidden
EMB = 32        # embedding dim (embed_net output)
NCLUST = 16     # number of clusters (cluster_net output)
NPAD = 128      # lane-dense padded cluster dim (multiple of 128)

# Batch tile: whole batch in one grid step while it fits; caps at 2048 rows
# for large batches (f32, multiple of 8; weights stay VMEM-resident either way).
TB_CAP = 2048
TB = B if B <= TB_CAP else TB_CAP


def fullnet_kernel(x_ref, w1_ref, b1_ref, w2_ref, b2_ref, wc_ref, bc_ref, out_ref):
    # ---- embed_net: Linear -> ReLU -> Linear -> ReLU ----
    x = x_ref[...]
    h = jnp.dot(x, w1_ref[...], preferred_element_type=jnp.float32) + b1_ref[...]
    h = jnp.maximum(h, 0.0)
    e = jnp.dot(h, w2_ref[...], preferred_element_type=jnp.float32) + b2_ref[...]
    e = jnp.maximum(e, 0.0)
    # ---- cluster_net: Linear -> softmax over (padded) cluster lanes ----
    # Padded columns have zero weight and bias = -1e30, so exp() is exactly 0
    # and they contribute nothing to max / sum: result matches unpadded softmax.
    # Invariant: real logits are finite and >> -1e30 (always true with finite
    # weights/inputs), so the row max is never a padded lane.
    logits = jnp.dot(e, wc_ref[...], preferred_element_type=jnp.float32) + bc_ref[...]
    m = jnp.max(logits, axis=-1, keepdims=True)
    p = jnp.exp(logits - m)
    denom = jnp.sum(p, axis=-1, keepdims=True)
    # EUP approximate reciprocal + one Newton-Raphson step (~f32 accuracy).
    inv = pl.reciprocal(denom, approx=True)
    inv = inv * (2.0 - denom * inv)
    out_ref[...] = (p * inv).astype(out_ref.dtype)


def fullnet_forward(x, params):
    """Fused FullNet forward.

    Returns the lane-dense (B, NPAD) softmax; the real cluster probabilities
    live in the first NCLUST lanes (padded lanes are exactly 0). Slice lazily
    at the point of use to avoid a per-call slice-copy.
    """
    w1, b1, w2, b2, wc_p, bc_p = params   # cluster head already padded

    num_tiles = pl.cdiv(B, TB)

    # Advisory scheduling hint: lets XLA overlap the custom call instead of
    # treating it as opaque (small latency win in the launch-bound regime).
    flops = 2 * B * (IN * HID + HID * EMB + EMB * NPAD)
    transcendentals = B * NPAD            # exp
    bytes_accessed = 4 * (B * IN + B * NPAD                     # x in, probs out
                          + IN * HID + HID + HID * EMB + EMB    # embed_net params
                          + EMB * NPAD + NPAD)                  # cluster params

    def rep(shape):
        # Whole-array (replicated) block; constant index map keeps the block
        # VMEM-resident across batch tiles (no re-DMA per grid step).
        return pl.BlockSpec(shape, lambda i: (0, 0))

    # With a single grid step, parallel semantics are moot; for multi-tile
    # grids the batch axis is independent -> "parallel".
    dim_sem = ("arbitrary",) if num_tiles == 1 else ("parallel",)

    out_padded = pl.pallas_call(
        fullnet_kernel,
        out_shape=jax.ShapeDtypeStruct((B, NPAD), jnp.float32),
        grid_spec=pl.GridSpec(
            grid=(num_tiles,),
            in_specs=[
                pl.BlockSpec((TB, IN), lambda i: (i, 0)),   # x tile over batch
                rep((IN, HID)),
                rep((1, HID)),
                rep((HID, EMB)),
                rep((1, EMB)),
                rep((EMB, NPAD)),
                rep((1, NPAD)),
            ],
            out_specs=pl.BlockSpec((TB, NPAD), lambda i: (i, 0)),
        ),
        compiler_params=pltpu.CompilerParams(dimension_semantics=dim_sem),
        cost_estimate=pl.CostEstimate(
            flops=flops,
            transcendentals=transcendentals,
            bytes_accessed=bytes_accessed,
        ),
    )(x, w1, b1, w2, b2, wc_p, bc_p)

    return out_padded


def init_params(key):
    ks = jax.random.split(key, 6)
    # deterministic "Kaiming-ish" scaled normal init
    w1 = jax.random.normal(ks[0], (IN, HID), jnp.float32) * (2.0 / IN) ** 0.5
    b1 = jax.random.normal(ks[1], (1, HID), jnp.float32) * 0.01
    w2 = jax.random.normal(ks[2], (HID, EMB), jnp.float32) * (2.0 / HID) ** 0.5
    b2 = jax.random.normal(ks[3], (1, EMB), jnp.float32) * 0.01
    wc = jax.random.normal(ks[4], (EMB, NCLUST), jnp.float32) * (1.0 / EMB) ** 0.5
    bc = jax.random.normal(ks[5], (1, NCLUST), jnp.float32) * 0.01
    # Pre-pad the cluster head ONCE here (not per forward call): zero weights
    # and -1e30 bias in the padded lanes make the padded logits exp() to
    # exactly 0 under softmax, so lanes [:NCLUST] match the unpadded model.
    wc_p = jnp.pad(wc, ((0, 0), (0, NPAD - NCLUST)))
    bc_p = jnp.pad(bc, ((0, 0), (0, NPAD - NCLUST)), constant_values=-1e30)
    return (w1, b1, w2, b2, wc_p, bc_p)


def reference_forward(x, params):
    # Pure-JAX reference of the original (unpadded) FullNet forward.
    w1, b1, w2, b2, wc_p, bc_p = params
    wc = wc_p[:, :NCLUST]
    bc = bc_p[:, :NCLUST]
    h = jnp.maximum(x @ w1 + b1, 0.0)
    e = jnp.maximum(h @ w2 + b2, 0.0)
    logits = e @ wc + bc
    return jax.nn.softmax(logits, axis=-1)


if __name__ == "__main__":
    key = jax.random.PRNGKey(0)
    kx, kp = jax.random.split(key)
    x = jax.random.normal(kx, (B, IN), jnp.float32)
    params = init_params(kp)

    out_padded = fullnet_forward(x, params)
    out_padded = jax.block_until_ready(out_padded)

    # Validation-only slice back to the real cluster count (lazy, at use site).
    out = out_padded[:, :NCLUST]

    ref = reference_forward(x, params)
    assert out.shape == (B, NCLUST)
    assert jnp.allclose(out, ref, atol=1e-5, rtol=1e-5), "mismatch vs reference"
    # softmax rows sum to 1 and padded lanes are exactly zero
    assert jnp.allclose(jnp.sum(out, axis=-1), 1.0, atol=1e-5)
    assert bool(jnp.all(out_padded[:, NCLUST:] == 0.0))

    print("KERNEL_OK")
</pallas_src>

<mosaic_0001>
module attributes {stable_mosaic.version = 11 : i64} {
  func.func @fullnet_kernel(%arg0: i32, %arg1: memref<16x32xf32, #tpu.memory_space<vmem>>, %arg2: memref<32x64xf32, #tpu.memory_space<vmem>>, %arg3: memref<1x64xf32, #tpu.memory_space<vmem>>, %arg4: memref<64x32xf32, #tpu.memory_space<vmem>>, %arg5: memref<1x32xf32, #tpu.memory_space<vmem>>, %arg6: memref<32x128xf32, #tpu.memory_space<vmem>>, %arg7: memref<1x128xf32, #tpu.memory_space<vmem>>, %arg8: memref<16x128xf32, #tpu.memory_space<vmem>>) attributes {dimension_semantics = [#tpu.dimension_semantics<arbitrary>], iteration_bounds = array<i64: 1>, scalar_prefetch = 0 : i64, scratch_operands = 0 : i64, tpu.core_type = #tpu.core_type<tc>, window_params = [{transform_indices = @transform_0, window_bounds = array<i64: 16, 32>}, {pipeline_mode = #tpu.pipeline_mode<synchronous>, transform_indices = @transform_1, window_bounds = array<i64: 32, 64>}, {pipeline_mode = #tpu.pipeline_mode<synchronous>, transform_indices = @transform_2, window_bounds = array<i64: 1, 64>}, {pipeline_mode = #tpu.pipeline_mode<synchronous>, transform_indices = @transform_3, window_bounds = array<i64: 64, 32>}, {pipeline_mode = #tpu.pipeline_mode<synchronous>, transform_indices = @transform_4, window_bounds = array<i64: 1, 32>}, {pipeline_mode = #tpu.pipeline_mode<synchronous>, transform_indices = @transform_5, window_bounds = array<i64: 32, 128>}, {pipeline_mode = #tpu.pipeline_mode<synchronous>, transform_indices = @transform_6, window_bounds = array<i64: 1, 128>}, {transform_indices = @transform_7, window_bounds = array<i64: 16, 128>}]} {
    %c0 = arith.constant 0 : index
    %c0_0 = arith.constant 0 : index
    %0 = vector.load %arg1[%c0, %c0_0] : memref<16x32xf32, #tpu.memory_space<vmem>>, vector<16x32xf32>
    %c0_1 = arith.constant 0 : index
    %c0_2 = arith.constant 0 : index
    %1 = vector.load %arg2[%c0_1, %c0_2] : memref<32x64xf32, #tpu.memory_space<vmem>>, vector<32x64xf32>
    %cst = arith.constant dense<0.000000e+00> : vector<16x64xf32>
    %2 = tpu.matmul %0, %1, %cst {dimension_numbers = #tpu.dot_dimension_numbers<[1], [0], [0], [1], [0, 0, 1, 1], [], []>} : vector<16x32xf32>, vector<32x64xf32>, vector<16x64xf32> -> vector<16x64xf32>
    %c0_3 = arith.constant 0 : index
    %c0_4 = arith.constant 0 : index
    %3 = vector.load %arg3[%c0_3, %c0_4] : memref<1x64xf32, #tpu.memory_space<vmem>>, vector<1x64xf32>
    %4 = vector.broadcast %3 : vector<1x64xf32> to vector<16x64xf32>
    %5 = arith.addf %2, %4 : vector<16x64xf32>
    %cst_5 = arith.constant 0.000000e+00 : f32
    %6 = vector.broadcast %cst_5 : f32 to vector<16x64xf32>
    %7 = arith.maximumf %5, %6 : vector<16x64xf32>
    %c0_6 = arith.constant 0 : index
    %c0_7 = arith.constant 0 : index
    %8 = vector.load %arg4[%c0_6, %c0_7] : memref<64x32xf32, #tpu.memory_space<vmem>>, vector<64x32xf32>
    %cst_8 = arith.constant dense<0.000000e+00> : vector<16x32xf32>
    %9 = tpu.matmul %7, %8, %cst_8 {dimension_numbers = #tpu.dot_dimension_numbers<[1], [0], [0], [1], [0, 0, 1, 1], [], []>} : vector<16x64xf32>, vector<64x32xf32>, vector<16x32xf32> -> vector<16x32xf32>
    %c0_9 = arith.constant 0 : index
    %c0_10 = arith.constant 0 : index
    %10 = vector.load %arg5[%c0_9, %c0_10] : memref<1x32xf32, #tpu.memory_space<vmem>>, vector<1x32xf32>
    %11 = vector.broadcast %10 : vector<1x32xf32> to vector<16x32xf32>
    %12 = arith.addf %9, %11 : vector<16x32xf32>
    %cst_11 = arith.constant 0.000000e+00 : f32
    %13 = vector.broadcast %cst_11 : f32 to vector<16x32xf32>
    %14 = arith.maximumf %12, %13 : vector<16x32xf32>
    %c0_12 = arith.constant 0 : index
    %c0_13 = arith.constant 0 : index
    %15 = vector.load %arg6[%c0_12, %c0_13] : memref<32x128xf32, #tpu.memory_space<vmem>>, vector<32x128xf32>
    %cst_14 = arith.constant dense<0.000000e+00> : vector<16x128xf32>
    %16 = tpu.matmul %14, %15, %cst_14 {dimension_numbers = #tpu.dot_dimension_numbers<[1], [0], [0], [1], [0, 0, 1, 1], [], []>} : vector<16x32xf32>, vector<32x128xf32>, vector<16x128xf32> -> vector<16x128xf32>
    %c0_15 = arith.constant 0 : index
    %c0_16 = arith.constant 0 : index
    %17 = vector.load %arg7[%c0_15, %c0_16] : memref<1x128xf32, #tpu.memory_space<vmem>>, vector<1x128xf32>
    %18 = vector.broadcast %17 : vector<1x128xf32> to vector<16x128xf32>
    %19 = arith.addf %16, %18 : vector<16x128xf32>
    %cst_17 = arith.constant dense<0xFF800000> : vector<16xf32>
    %20 = vector.multi_reduction <maximumf>, %19, %cst_17 [1] : vector<16x128xf32> to vector<16xf32>
    %21 = vector.shape_cast %20 : vector<16xf32> to vector<16x1xf32>
    %22 = vector.broadcast %21 : vector<16x1xf32> to vector<16x128xf32>
    %23 = arith.subf %19, %22 : vector<16x128xf32>
    %24 = math.exp %23 : vector<16x128xf32>
    %cst_18 = arith.constant dense<0.000000e+00> : vector<16xf32>
    %25 = vector.multi_reduction <add>, %24, %cst_18 [1] : vector<16x128xf32> to vector<16xf32>
    %26 = vector.shape_cast %25 : vector<16xf32> to vector<16x1xf32>
    %27 = tpu.reciprocal %26 {approx = true} : vector<16x1xf32> -> vector<16x1xf32>
    %28 = arith.mulf %26, %27 : vector<16x1xf32>
    %cst_19 = arith.constant 2.000000e+00 : f32
    %29 = vector.broadcast %cst_19 : f32 to vector<16x1xf32>
    %30 = arith.subf %29, %28 : vector<16x1xf32>
    %31 = arith.mulf %27, %30 : vector<16x1xf32>
    %32 = vector.broadcast %31 : vector<16x1xf32> to vector<16x128xf32>
    %33 = arith.mulf %24, %32 : vector<16x128xf32>
    %c0_20 = arith.constant 0 : index
    %c0_21 = arith.constant 0 : index
    %34 = vector.load %arg8[%c0_20, %c0_21] : memref<16x128xf32, #tpu.memory_space<vmem>>, vector<16x128xf32>
    tpu.vector_store %arg8[%c0_20, %c0_21], %33 {strides = array<i32>} : memref<16x128xf32, #tpu.memory_space<vmem>>, vector<16x128xf32>,
    return
  }
  func.func @transform_0(%arg0: i32) -> (i32, i32) {
    %c0_i32 = arith.constant 0 : i32
    %c0_i32_0 = arith.constant 0 : i32
    return %arg0, %c0_i32 : i32, i32
  }
  func.func @transform_1(%arg0: i32) -> (i32, i32) {
    %c0_i32 = arith.constant 0 : i32
    %c0_i32_0 = arith.constant 0 : i32
    %c0_i32_1 = arith.constant 0 : i32
    return %c0_i32, %c0_i32_0 : i32, i32
  }
  func.func @transform_2(%arg0: i32) -> (i32, i32) {
    %c0_i32 = arith.constant 0 : i32
    %c0_i32_0 = arith.constant 0 : i32
    %c0_i32_1 = arith.constant 0 : i32
    return %c0_i32, %c0_i32_0 : i32, i32
  }
  func.func @transform_3(%arg0: i32) -> (i32, i32) {
    %c0_i32 = arith.constant 0 : i32
    %c0_i32_0 = arith.constant 0 : i32
    %c0_i32_1 = arith.constant 0 : i32
    return %c0_i32, %c0_i32_0 : i32, i32
  }
  func.func @transform_4(%arg0: i32) -> (i32, i32) {
    %c0_i32 = arith.constant 0 : i32
    %c0_i32_0 = arith.constant 0 : i32
    %c0_i32_1 = arith.constant 0 : i32
    return %c0_i32, %c0_i32_0 : i32, i32
  }
  func.func @transform_5(%arg0: i32) -> (i32, i32) {
    %c0_i32 = arith.constant 0 : i32
    %c0_i32_0 = arith.constant 0 : i32
    %c0_i32_1 = arith.constant 0 : i32
    return %c0_i32, %c0_i32_0 : i32, i32
  }
  func.func @transform_6(%arg0: i32) -> (i32, i32) {
    %c0_i32 = arith.constant 0 : i32
    %c0_i32_0 = arith.constant 0 : i32
    %c0_i32_1 = arith.constant 0 : i32
    return %c0_i32, %c0_i32_0 : i32, i32
  }
  func.func @transform_7(%arg0: i32) -> (i32, i32) {
    %c0_i32 = arith.constant 0 : i32
    %c0_i32_0 = arith.constant 0 : i32
    return %arg0, %c0_i32 : i32, i32
  }
}

</mosaic_0001>

<bundles_post_ra>
// kernel: tpu_custom_call.1
= control target key start
LH: loop header
LB: loop body
LE: loop exit
PB: predicated region body
PF: predicated region fallthrough
CT: control target
= control target key end

     0   :  { %vm40_vm0 = vcmask 261120   ;;  %s618_s0 = inlined_call_operand.vmem [shape: f32[16,32], index: 0, kind: input, shape index: {}]   ;;  %s619_s1 = inlined_call_operand.vmem [shape: f32[32,64], index: 1, kind: input, shape index: {}]   ;;  %s620_s2 = inlined_call_operand.vmem [shape: f32[1,64], index: 2, kind: input, shape index: {}]   ;;  %s621_s3 = inlined_call_operand.vmem [shape: f32[64,32], index: 3, kind: input, shape index: {}]   ;;  %s622_s4 = inlined_call_operand.vmem [shape: f32[1,32], index: 4, kind: input, shape index: {}]   ;;  %s623_s5 = inlined_call_operand.vmem [shape: f32[32,128], index: 5, kind: input, shape index: {}]   ;;  %s624_s6 = inlined_call_operand.vmem [shape: f32[1,128], index: 6, kind: input, shape index: {}]   ;;  %s625_s7 = inlined_call_operand.hbm [shape: f32[16,128], index: 7, kind: output, shape index: {}]  }
   0x1   :  { %v29_v0 = vld [vmem:[%s619_s1] sm:$0xff]  ;;  %v30_v1 = vld [vmem:[%s619_s1 + $0x8] sm:$0xff]  ;;  %v31_v2 = vld [vmem:[%s619_s1 + $0x10] sm:$0xff] }
   0x2   :  { %v429_v3 = vpack.c.bf16 %v30_v1, %v29_v0  ;;  %v32_v4 = vld [vmem:[%s619_s1 + $0x18] sm:$0xff]  ;;  %v27_v5 = vld [vmem:[%s618_s0] sm:$0xff]  ;;  %v125_v8 = vld [vmem:[%s621_s3 + $0x8] sm:$0xff] }
   0x3   :  { %v433_v6 = vpack.c.bf16 %v32_v4, %v31_v2  ;;  %396 = vmatprep.mubr.msk.f32.mxu0 %vm40_vm0, %v27_v5  ;;  %v124_v7 = vld [vmem:[%s621_s3] sm:$0xff]  ;;  %v126_v9 = vld [vmem:[%s621_s3 + $0x10] sm:$0xff]  ;;  %v127_v11 = vld [vmem:[%s621_s3 + $0x18] sm:$0xff] }
   0x4   :  { %430 = vmatprep.subr.bf16.mxu0 %v429_v3  ;;  %v437_v10 = vpack.c.bf16 %v125_v8, %v124_v7  ;;  %v441_v12 = vpack.c.bf16 %v127_v11, %v126_v9  ;;  %v128_v13 = vld [vmem:[%s621_s3 + $0x20] sm:$0xff]  ;;  %v129_v14 = vld [vmem:[%s621_s3 + $0x28] sm:$0xff] }
   0x5   :  { %432 = vmatpush3.bf16.msra.mxu0 %v429_v3 }
   0x6   :  { %12 = vsyncpa [#allocation3], 0  ;;  %434 = vmatprep.subr.bf16.mxu0 %v433_v6  ;;  %438 = vmatprep.subr.bf16.mxu1 %v437_v10  ;;  %v445_v15 = vpack.c.bf16 %v129_v14, %v128_v13  ;;  %v28_v16 = vld [vmem:[%s618_s0 + $0x8] sm:$0xff]  ;;  %v130_v17 = vld [vmem:[%s621_s3 + $0x30] sm:$0xff]  ;;  %vm139_vm1 = vcmask 523264  }
   0x7   :  { %440 = vmatpush3.bf16.msra.mxu1 %v437_v10  ;;  %v131_v18 = vld [vmem:[%s621_s3 + $0x38] sm:$0xff]  ;;  %v223_v20 = vld [vmem:[%s623_s5] sm:$0xff]  ;;  %v224_v21 = vld [vmem:[%s623_s5 + $0x8] sm:$0xff] }
   0x8   :  { %442 = vmatprep.subr.bf16.mxu1 %v441_v12  ;;  %v449_v19 = vpack.c.bf16 %v131_v18, %v130_v17  ;;  %v453_v22 = vpack.c.bf16 %v224_v21, %v223_v20  ;;  %v357_v23 = vld [vmem:[%s620_s2] ss:$0 sm:$0xff]  ;;  %v225_v30 = vld [vmem:[%s623_s5 + $0x10] sm:$0xff]  ;;  %v226_v31 = vld [vmem:[%s623_s5 + $0x18] sm:$0xff] }
   0x9   :  { %436 = vmatpush3.bf16.msra.mxu0 %v433_v6  ;;  %v457_v32 = vpack.c.bf16 %v226_v31, %v225_v30  ;;  %v360_v33 = vld [vmem:[%s622_s4] ss:$0 sm:$0xff]  ;;  %s496_s4 = smov [#allocation2]  }
   0xa   :  { %454 = vmatprep.subr.bf16.mxu0 %v453_v22  ;;  %v363_v40 = vld [vmem:[%s624_s6] ss:$0 sm:$0xff]  ;;  %s346_s5 = sshll.u32 %s496_s4, 4  ;;  %s347_s5 = int_to_ptr.vmem [resolvable:$true] %s346_s5 }
   0xb   :  { %444 = vmatpush3.bf16.msra.mxu1 %v441_v12  ;;  %s472_s6 = scalar_lea.vmem %s347_s5, 256  ;;  %p477_p1 = scmp.lt.s32.totalorder %s347_s5, %s347_s5 }
   0xc   :  { %397 = vmatmul.mubr.msk.f32.vlgmr.msra.gmra.mrb[0].mxu0 %vm40_vm0, %v28_v16  ;;  %446 = vmatprep.subr.bf16.mxu1 %v445_v15  ;;  %p473_p0 = scmp.ne.s32.totalorder %s347_s5, %s472_s6  ;;  %p478_p2 = scmp.lt.s32.totalorder %s472_s6, %s472_s6 }
   0xd   :  { %456 = vmatpush3.bf16.msra.mxu0 %v453_v22 }
   0xe   :  { %458 = vmatprep.subr.bf16.mxu0 %v457_v32  ;;  %p479_p3 = por %p478_p2, %p477_p1 }
   0xf   :  { %448 = vmatpush3.bf16.msra.mxu1 %v445_v15 }
  0x10   :  { %450 = vmatprep.subr.bf16.mxu1 %v449_v19  ;;  %p480_p4 = pnand %p479_p3, %p473_p0 }
  0x11   :  { %460 = vmatpush3.bf16.msra.mxu0 %v457_v32 }
  0x13   :  { %452 = vmatpush3.bf16.msra.mxu1 %v449_v19 }
  0xdf   :  { %v398_v24 = vpop.f32.mrb[0].mxu0 }
  0xe0   :  { %v119_v25 = vadd.f32 %v398_v24, %v357_v23  ;;  %v113_v26 = vpop.f32.mrb[1].mxu0 }
  0xe1   :  { %v114_v27 = vadd.f32 %v357_v23, %v113_v26 }
  0xe2   :  { %v123_v29 = vmax.f32 %v119_v25, 0.0 }
  0xe3   :  { %v122_v28 = vmax.f32 %v114_v27, 0.0 }
  0xe5   :  { %415 = vmatprep.mubr.msk.f32.mxu1 %vm139_vm1, %v122_v28 }
  0xe6   :  { %416 = vmatmul.mubr.msk.f32.vlgmr.msra.gmra.mrb[0].mxu1 %vm139_vm1, %v123_v29 }
 0x1b9   :  { %v417_v34 = vpop.f32.mrb[0].mxu1 }
 0x1ba   :  { %v218_v35 = vadd.f32 %v417_v34, %v360_v33  ;;  %v212_v36 = vpop.f32.mrb[1].mxu1 }
 0x1bb   :  { %v213_v37 = vadd.f32 %v360_v33, %v212_v36 }
 0x1bc   :  { %v222_v39 = vmax.f32 %v218_v35, 0.0 }
 0x1bd   :  { %v221_v38 = vmax.f32 %v213_v37, 0.0 }
 0x1bf   :  { %426 = vmatprep.mubr.msk.f32.mxu0 %vm40_vm0, %v221_v38 }
 0x1c0   :  { %427 = vmatmul.mubr.msk.f32.vlgmr.msra.gmra.mrb[2].mxu0 %vm40_vm0, %v222_v39 }
 0x293   :  { %v428_v41 = vpop.f32.mrb[2].mxu0 }
 0x294   :  { %v306_v42 = vpop.f32.mrb[3].mxu0  ;;  %v312_v44 = vadd.f32 %v428_v41, %v363_v40 }
 0x295   :  { %v307_v43 = vadd.f32 %v363_v40, %v306_v42 }
 0x297   :  { %315 = vmax.xlane.f32.xlu0 %v307_v43 }
 0x29b   :  { %317 = vmax.xlane.f32.xlu0 %v312_v44 }
 0x324   :  { %v316_v45 = vpop.xlane.xlu0 %315 }
 0x325   :  { %v319_v46 = vsub.f32 %v307_v43, %v316_v45 }
 0x327   :  { %v321_v47 = vmul.f32 1.442695, %v319_v46 }
 0x328   :  { %v318_v48 = vpop.xlane.xlu0 %317 }
 0x329   :  { %464 = vpow2.f32 %v321_v47  ;;  %v320_v49 = vsub.f32 %v312_v44, %v318_v48 }
 0x32b   :  { %v323_v50 = vmul.f32 1.442695, %v320_v49 }
 0x32d   :  { %466 = vpow2.f32 %v323_v50 }
 0x333   :  { %v465_v51 = vpop.eup %464 }
 0x334   :  { %325 = vadd.xlane.f32.xlu1 %v465_v51 }
 0x337   :  { %v467_v52 = vpop.eup %466 }
 0x338   :  { %327 = vadd.xlane.f32.xlu1 %v467_v52 }
 0x3c1   :  { %v326_v53 = vpop.xlane.xlu1 %325 }
 0x3c2   :  { %468 = vrcp.f32 %v326_v53 }
 0x3c5   :  { %v328_v54 = vpop.xlane.xlu1 %327 }
 0x3c6   :  { %470 = vrcp.f32 %v328_v54 }
 0x3cc   :  { %v469_v55 = vpop.eup %468 }
 0x3cd   :  { %v331_v56 = vmul.f32 %v469_v55, %v326_v53 }
 0x3cf   :  { %v333_v57 = vsub.f32 2.0, %v331_v56 }
 0x3d0   :  { %v471_v58 = vpop.eup %470 }
 0x3d1   :  { %v335_v59 = vmul.f32 %v469_v55, %v333_v57  ;;  %v332_v60 = vmul.f32 %v471_v58, %v328_v54 }
 0x3d3   :  { %v337_v61 = vmul.f32 %v465_v51, %v335_v59  ;;  %v334_v62 = vsub.f32 2.0, %v332_v60 }
 0x3d5   :  { %339 = vst [vmem:[#allocation2] sm:$0xff] %v337_v61  ;;  %v336_v63 = vmul.f32 %v471_v58, %v334_v62 }
 0x3d7   :  { %v338_v0 = vmul.f32 %v467_v52, %v336_v63 }
 0x3d9   :  { %340 = vst [vmem:[#allocation2 + $0x8] sm:$0xff] %v338_v0 }
 0x3da   :  { %483 = shalt.err (!%p480_p4)
}
 0x3db   :  { %s484_s17 = scalar_lea.hbm %s625_s7, 256 }
 0x3dc   :  { %p485_p5 = scmp.ne.s32.totalorder %s625_s7, %s484_s17  ;;  %p488_p6 = scmp.lt.u32.totalorder %s484_s17, %s625_s7 }
 0x3de   :  { %p490_p7 = pnand %p488_p6, %p485_p5 }
 0x3e0   :  { %493 = shalt.err (!%p490_p7)
}
 0x3e1   :  { %s497_s22 = smov 128   ;;  %s498_s23 = smov 8  }
 0x3e2   :  { %352 = dma.vmem_to_hbm [thread:$0]  %s347_s5, 256, %s625_s7, [#allocation3], %s497_s22, %s497_s22, %s498_s23  }
 0x3e3   :  { %494 = dma.done.wait [#allocation3], 256  }
 0x3e4   :  { %495 = vsyncadd [#allocation3], 4294967040 }
 0x3e5   :  { %356 = vsyncpa [#allocation3], 1 }

</bundles_post_ra>
